<compile_context>
chip_gen: v5e
topology: v5e:2x2
jax: 0.10.0
libtpu: 0.0.40
codegen_flags: <defaults>
</compile_context>

<pallas_src>
import functools

import jax
import jax.numpy as jnp
from jax.experimental import pallas as pl
from jax.experimental.pallas import tpu as pltpu

_BN_EPS = 1e-5
_LANE = 128
_SUBLANE = 8


def _round_up(n, m):
    return ((n + m - 1) // m) * m


def _network_kernel(x_ref, w_ref, p_ref, o_ref, *, s, a):
    """Whole MLP forward on one fully-resident batch block.

    x_ref : (B, s)        f32   input states
    w_ref : (3, kp, hp)   bf16  zero-padded weight stack [w1; w2; w3], (in, out)
    p_ref : (8, hp)       f32   packed rows: b1, bn_w, bn_b, b2, b3, 0, 0, 0
    o_ref : (B, a)        f32   actions
    """
    x = x_ref[...].astype(jnp.bfloat16)

    b1 = p_ref[0:1, :]
    bn_w = p_ref[1:2, :]
    bn_b = p_ref[2:3, :]
    b2 = p_ref[3:4, :]
    b3 = p_ref[4:5, :]

    # ---- Linear 1 (bf16 MXU operands, f32 accumulation) ----
    w1 = w_ref[0][:s, :]                              # static slice of the stack
    h = jnp.dot(x, w1, preferred_element_type=jnp.float32) + b1

    # ---- BatchNorm1d (training-mode batch stats, biased var), two-pass, f32 ----
    # Padded lanes stay exactly 0: c = 0, bn_w/bn_b padding = 0.
    mean = jnp.mean(h, axis=0, keepdims=True)
    c = h - mean
    var = jnp.mean(c * c, axis=0, keepdims=True)
    scale = bn_w * jax.lax.rsqrt(var + _BN_EPS)
    h = jnp.maximum(c * scale + bn_b, 0.0)            # BN affine + ReLU

    # ---- Linear 2 + ReLU ----
    h = jnp.maximum(
        jnp.dot(h.astype(jnp.bfloat16), w_ref[1],
                preferred_element_type=jnp.float32) + b2, 0.0)

    # ---- Linear 3 + Tanh (padded lanes are tanh(0)=0, dropped at the store) ----
    z = jnp.dot(h.astype(jnp.bfloat16), w_ref[2],
                preferred_element_type=jnp.float32) + b3
    o_ref[...] = jnp.tanh(z)[:, :a]


def prepare_params(params):
    """One-time packing of the parameters into TPU-friendly operands.

    Call once and reuse the result: the per-forward hot path is then a single
    pallas_call with no padding / reshaping / concatenation XLA ops.
    """
    (w1, b1, bn_w, bn_b, w2, b2, w3, b3) = params
    s, h1 = w1.shape
    h2 = w2.shape[1]
    a = w3.shape[1]

    hp = _round_up(max(h1, h2, a), _LANE)             # lane-dense hidden width
    kp = max(_round_up(s, _SUBLANE), hp)              # rows of the weight stack

    def pad_w(w):
        r, c = w.shape
        return jnp.pad(w, ((0, kp - r), (0, hp - c)))

    # (3, kp, hp) bf16 weight stack, pre-transposed to (in, out).
    # TODO(synk): keep the final layer in f32 if bit-exact parity with the f32
    # PyTorch module matters (w3 init at +/-3e-3 gets bf16-rounded here).
    w_stack = jnp.stack([pad_w(w1), pad_w(w2), pad_w(w3)]).astype(jnp.bfloat16)

    def row(v):
        v = v.reshape(1, -1)
        return jnp.pad(v, ((0, 0), (0, hp - v.shape[-1])))

    packed = jnp.concatenate(
        [row(b1), row(bn_w), row(bn_b), row(b2), row(b3),
         jnp.zeros((3, hp), jnp.float32)], axis=0)    # (8, hp) f32, one DMA

    return {"w": w_stack, "p": packed, "s": s, "a": a}


def network_forward(x, prep):
    """Hot path: exactly one gridless Pallas invocation on pre-packed operands."""
    B = x.shape[0]
    kernel = functools.partial(_network_kernel, s=prep["s"], a=prep["a"])
    vmem = pl.BlockSpec(memory_space=pltpu.MemorySpace.VMEM)
    # Whole batch resident in VMEM -> full-batch BatchNorm statistics (matches
    # PyTorch); no grid, no pipeline bookkeeping, unpadded (B, A) output.
    return pl.pallas_call(
        kernel,
        out_shape=jax.ShapeDtypeStruct((B, prep["a"]), jnp.float32),
        in_specs=[vmem, vmem, vmem],
        out_specs=vmem,
    )(x, prep["w"], prep["p"])


def init_params(key, state_size, h1, h2, action_size):
    """Deterministic init mirroring Network.reset_parameters():
       hidden Linear weights ~ U(-lim, lim), output Linear weight ~ U(-3e-3, 3e-3),
       Linear biases keep PyTorch's default U(-1/sqrt(fan_in), 1/sqrt(fan_in))
       (reset_parameters only touches weights), BatchNorm weight=1, bias=0."""
    ks = jax.random.split(key, 6)

    def u(k, shape, lo, hi):
        return jax.random.uniform(k, shape, jnp.float32, lo, hi)

    lim1 = 1.0 / jnp.sqrt(jnp.float32(state_size))
    lim2 = 1.0 / jnp.sqrt(jnp.float32(h1))
    lim3 = 1.0 / jnp.sqrt(jnp.float32(h2))

    # weights stored already transposed: (in, out)
    w1 = u(ks[0], (state_size, h1), -lim1, lim1)
    b1 = u(ks[1], (1, h1), -lim1, lim1)
    w2 = u(ks[2], (h1, h2), -lim2, lim2)
    b2 = u(ks[3], (1, h2), -lim2, lim2)
    w3 = u(ks[4], (h2, action_size), -3e-3, 3e-3)
    b3 = u(ks[5], (1, action_size), -lim3, lim3)

    bn_w = jnp.ones((1, h1), jnp.float32)
    bn_b = jnp.zeros((1, h1), jnp.float32)
    return (w1, b1, bn_w, bn_b, w2, b2, w3, b3)


if __name__ == "__main__":
    state_size, action_size = 32, 4
    h1, h2 = 64, 64
    batch = 2

    key = jax.random.PRNGKey(0)
    k_x, k_p = jax.random.split(key)
    x = jax.random.normal(k_x, (batch, state_size), jnp.float32)

    params = init_params(k_p, state_size, h1, h2, action_size)
    prep = prepare_params(params)                       # one-time packing
    prep = {k: (jax.block_until_ready(v) if isinstance(v, jax.Array) else v)
            for k, v in prep.items()}

    out = jax.block_until_ready(network_forward(x, prep))
    assert out.shape == (batch, action_size)
    assert bool(jnp.all(jnp.isfinite(out)))
    assert bool(jnp.all(jnp.abs(out) <= 1.0))           # tanh range
    print("KERNEL_OK")
</pallas_src>

<mosaic_0001>
module attributes {stable_mosaic.version = 11 : i64} {
  func.func @_network_kernel(%arg0: memref<2x32xf32, #tpu.memory_space<vmem>>, %arg1: memref<3x128x128xbf16, #tpu.memory_space<vmem>>, %arg2: memref<8x128xf32, #tpu.memory_space<vmem>>, %arg3: memref<2x4xf32, #tpu.memory_space<vmem>>) attributes {dimension_semantics = [], scalar_prefetch = 0 : i64, scratch_operands = 0 : i64, tpu.core_type = #tpu.core_type<tc>} {
    %c0 = arith.constant 0 : index
    %c0_0 = arith.constant 0 : index
    %0 = vector.load %arg0[%c0, %c0_0] : memref<2x32xf32, #tpu.memory_space<vmem>>, vector<2x32xf32>
    %1 = arith.truncf %0 : vector<2x32xf32> to vector<2x32xbf16>
    %c0_1 = arith.constant 0 : index
    %c0_2 = arith.constant 0 : index
    %2 = vector.load %arg2[%c0_1, %c0_2] : memref<8x128xf32, #tpu.memory_space<vmem>>, vector<1x128xf32>
    %c1 = arith.constant 1 : index
    %c0_3 = arith.constant 0 : index
    %3 = vector.load %arg2[%c1, %c0_3] : memref<8x128xf32, #tpu.memory_space<vmem>>, vector<1x128xf32>
    %c2 = arith.constant 2 : index
    %c0_4 = arith.constant 0 : index
    %4 = vector.load %arg2[%c2, %c0_4] : memref<8x128xf32, #tpu.memory_space<vmem>>, vector<1x128xf32>
    %c3 = arith.constant 3 : index
    %c0_5 = arith.constant 0 : index
    %5 = vector.load %arg2[%c3, %c0_5] : memref<8x128xf32, #tpu.memory_space<vmem>>, vector<1x128xf32>
    %c4 = arith.constant 4 : index
    %c0_6 = arith.constant 0 : index
    %6 = vector.load %arg2[%c4, %c0_6] : memref<8x128xf32, #tpu.memory_space<vmem>>, vector<1x128xf32>
    %c0_7 = arith.constant 0 : index
    %c0_8 = arith.constant 0 : index
    %c0_9 = arith.constant 0 : index
    %7 = vector.load %arg1[%c0_7, %c0_8, %c0_9] : memref<3x128x128xbf16, #tpu.memory_space<vmem>>, vector<1x128x128xbf16>
    %8 = vector.shape_cast %7 : vector<1x128x128xbf16> to vector<128x128xbf16>
    %9 = vector.extract_strided_slice %8 {offsets = [0, 0], sizes = [32, 128], strides = [1, 1]} : vector<128x128xbf16> to vector<32x128xbf16>
    %cst = arith.constant dense<0.000000e+00> : vector<2x128xf32>
    %10 = tpu.matmul %1, %9, %cst {dimension_numbers = #tpu.dot_dimension_numbers<[1], [0], [0], [1], [0, 0, 1, 1], [], []>} : vector<2x32xbf16>, vector<32x128xbf16>, vector<2x128xf32> -> vector<2x128xf32>
    %11 = vector.broadcast %2 : vector<1x128xf32> to vector<2x128xf32>
    %12 = arith.addf %10, %11 : vector<2x128xf32>
    %cst_10 = arith.constant dense<0.000000e+00> : vector<128xf32>
    %13 = vector.multi_reduction <add>, %12, %cst_10 [0] : vector<2x128xf32> to vector<128xf32>
    %14 = vector.shape_cast %13 : vector<128xf32> to vector<1x128xf32>
    %cst_11 = arith.constant 2.000000e+00 : f32
    %15 = vector.broadcast %cst_11 : f32 to vector<1x128xf32>
    %16 = arith.divf %14, %15 : vector<1x128xf32>
    %17 = vector.broadcast %16 : vector<1x128xf32> to vector<2x128xf32>
    %18 = arith.subf %12, %17 : vector<2x128xf32>
    %19 = arith.mulf %18, %18 : vector<2x128xf32>
    %cst_12 = arith.constant dense<0.000000e+00> : vector<128xf32>
    %20 = vector.multi_reduction <add>, %19, %cst_12 [0] : vector<2x128xf32> to vector<128xf32>
    %21 = vector.shape_cast %20 : vector<128xf32> to vector<1x128xf32>
    %cst_13 = arith.constant 2.000000e+00 : f32
    %22 = vector.broadcast %cst_13 : f32 to vector<1x128xf32>
    %23 = arith.divf %21, %22 : vector<1x128xf32>
    %cst_14 = arith.constant 9.99999974E-6 : f32
    %24 = vector.broadcast %cst_14 : f32 to vector<1x128xf32>
    %25 = arith.addf %23, %24 : vector<1x128xf32>
    %26 = math.rsqrt %25 : vector<1x128xf32>
    %27 = arith.mulf %3, %26 : vector<1x128xf32>
    %28 = vector.broadcast %27 : vector<1x128xf32> to vector<2x128xf32>
    %29 = arith.mulf %18, %28 : vector<2x128xf32>
    %30 = vector.broadcast %4 : vector<1x128xf32> to vector<2x128xf32>
    %31 = arith.addf %29, %30 : vector<2x128xf32>
    %cst_15 = arith.constant 0.000000e+00 : f32
    %32 = vector.broadcast %cst_15 : f32 to vector<2x128xf32>
    %33 = arith.maximumf %31, %32 : vector<2x128xf32>
    %34 = arith.truncf %33 : vector<2x128xf32> to vector<2x128xbf16>
    %c1_16 = arith.constant 1 : index
    %c0_17 = arith.constant 0 : index
    %c0_18 = arith.constant 0 : index
    %35 = vector.load %arg1[%c1_16, %c0_17, %c0_18] : memref<3x128x128xbf16, #tpu.memory_space<vmem>>, vector<1x128x128xbf16>
    %36 = vector.shape_cast %35 : vector<1x128x128xbf16> to vector<128x128xbf16>
    %cst_19 = arith.constant dense<0.000000e+00> : vector<2x128xf32>
    %37 = tpu.matmul %34, %36, %cst_19 {dimension_numbers = #tpu.dot_dimension_numbers<[1], [0], [0], [1], [0, 0, 1, 1], [], []>} : vector<2x128xbf16>, vector<128x128xbf16>, vector<2x128xf32> -> vector<2x128xf32>
    %38 = vector.broadcast %5 : vector<1x128xf32> to vector<2x128xf32>
    %39 = arith.addf %37, %38 : vector<2x128xf32>
    %cst_20 = arith.constant 0.000000e+00 : f32
    %40 = vector.broadcast %cst_20 : f32 to vector<2x128xf32>
    %41 = arith.maximumf %39, %40 : vector<2x128xf32>
    %42 = arith.truncf %41 : vector<2x128xf32> to vector<2x128xbf16>
    %c2_21 = arith.constant 2 : index
    %c0_22 = arith.constant 0 : index
    %c0_23 = arith.constant 0 : index
    %43 = vector.load %arg1[%c2_21, %c0_22, %c0_23] : memref<3x128x128xbf16, #tpu.memory_space<vmem>>, vector<1x128x128xbf16>
    %44 = vector.shape_cast %43 : vector<1x128x128xbf16> to vector<128x128xbf16>
    %cst_24 = arith.constant dense<0.000000e+00> : vector<2x128xf32>
    %45 = tpu.matmul %42, %44, %cst_24 {dimension_numbers = #tpu.dot_dimension_numbers<[1], [0], [0], [1], [0, 0, 1, 1], [], []>} : vector<2x128xbf16>, vector<128x128xbf16>, vector<2x128xf32> -> vector<2x128xf32>
    %46 = vector.broadcast %6 : vector<1x128xf32> to vector<2x128xf32>
    %47 = arith.addf %45, %46 : vector<2x128xf32>
    %48 = math.tanh %47 : vector<2x128xf32>
    %49 = vector.extract_strided_slice %48 {offsets = [0, 0], sizes = [2, 4], strides = [1, 1]} : vector<2x128xf32> to vector<2x4xf32>
    %c0_25 = arith.constant 0 : index
    %c0_26 = arith.constant 0 : index
    %50 = vector.load %arg3[%c0_25, %c0_26] : memref<2x4xf32, #tpu.memory_space<vmem>>, vector<2x4xf32>
    tpu.vector_store %arg3[%c0_25, %c0_26], %49 {strides = array<i32>} : memref<2x4xf32, #tpu.memory_space<vmem>>, vector<2x4xf32>,
    return
  }
}

</mosaic_0001>

<bundles_post_ra>
// kernel: tpu_custom_call.1
= control target key start
LH: loop header
LB: loop body
LE: loop exit
PB: predicated region body
PF: predicated region fallthrough
CT: control target
= control target key end

     0   :  { %8 = vsyncpa [#allocation3], 0  ;;  %s576_s0 = inlined_call_operand.hbm [shape: f32[2,32], index: 0, kind: input, shape index: {}]   ;;  %s577_s1 = inlined_call_operand.hbm [shape: bf16[3,128,128], index: 1, kind: input, shape index: {}]   ;;  %s578_s2 = inlined_call_operand.hbm [shape: f32[8,128], index: 2, kind: input, shape index: {}]   ;;  %s579_s3 = inlined_call_operand.hbm [shape: f32[2,4], index: 3, kind: output, shape index: {}]  }
   0x1   :  { %9 = vsyncpa [#allocation6], 0  ;;  %s26_s14 = sshll.u32 %s577_s1, 4  ;;  %s27_s14 = int_to_ptr.hbm [resolvable:$true] %s26_s14 }
   0x2   :  { %10 = vsyncpa [#allocation4], 0  ;;  %s535_s15 = smov [#allocation5]   ;;  %s16_s19 = sshll.u32 %s576_s0, 4  ;;  %s17_s19 = int_to_ptr.hbm [resolvable:$true] %s16_s19 }
   0x3   :  { %s28_s16 = sshll.u32 %s535_s15, 4  ;;  %s536_s20 = smov 64   ;;  %s29_s16 = int_to_ptr.vmem [resolvable:$true] %s28_s16 }
   0x4   :  { %s537_s21 = smov 4   ;;  %s538_s22 = smov [#allocation2]  }
   0x5   :  { %34 = dma.hbm_to_vmem [thread:$0]  %s27_s14, 3072, %s29_s16, [#allocation6], %s536_s20, %s536_s20, %s537_s21  }
   0x6   :  { %s18_s23 = sshll.u32 %s538_s22, 4  ;;  %s40_s26 = sshll.u32 %s578_s2, 4  ;;  %s19_s23 = int_to_ptr.vmem [resolvable:$true] %s18_s23  ;;  %s41_s26 = int_to_ptr.hbm [resolvable:$true] %s40_s26 }
   0x7   :  { %21 = dma.hbm_to_vmem [thread:$0]  %s17_s19, 32, %s19_s23, [#allocation3]  }
   0x8   :  { %s539_s1 = smov [#allocation7]  }
   0x9   :  { %s42_s27 = sshll.u32 %s539_s1, 4  ;;  %s43_s27 = int_to_ptr.vmem [resolvable:$true] %s42_s27 }
   0xa   :  { %45 = dma.hbm_to_vmem [thread:$0]  %s41_s26, 128, %s43_s27, [#allocation6]  }
   0xb   :  { %529 = dma.done.wait [#allocation3], 32  }
   0xc   :  { %530 = vsyncadd [#allocation3], 4294967264 }
   0xd   :  { %531 = dma.done.wait [#allocation6], 3200  }
   0xe   :  { %532 = vsyncadd [#allocation6], 4294964096  ;;  %v399_v0 = vld [vmem:[#allocation5 + $0x8] sm:$0xff]  ;;  %v398_v1 = vld [vmem:[#allocation5] sm:$0xff]  ;;  %vm83_vm0 = vcmask 261120   ;;  %v540_v4 = vmov 2.0  }
   0xf   :  { %93 = vmatpush.bf16.msra.mxu0 %v399_v0  ;;  %v59_v2 = vld [vmem:[#allocation2] sm:$0x3]  ;;  %427 = vrcp.f32 %v540_v4  ;;  %v423_v6 = vld [vmem:[#allocation7] ss:$0 sm:$0xff]  ;;  %vm100_vm1 = vcmask 1041408   ;;  %v406_v18 = vld [vmem:[#allocation5 + $0x70] sm:$0xff] }
  0x10   :  { %v60_v3 = vpack.c.bf16 %v59_v2, %v59_v2  ;;  %v407_v13 = vld [vmem:[#allocation5 + $0x78] sm:$0xff]  ;;  %v405_v22 = vld [vmem:[#allocation5 + $0x68] sm:$0xff]  ;;  %v404_v26 = vld [vmem:[#allocation5 + $0x60] sm:$0xff]  ;;  %s541_s0 = smov [#allocation8]   ;;  %s314_s30 = sshll.u32 %s579_s3, 4  ;;  %vm305_vm6 = vcmask 25600   ;;  %s315_s30 = int_to_ptr.hbm [resolvable:$true] %s314_s30 }
  0x11   :  { %210 = vmatpush.bf16.msra.mxu1 %v407_v13  ;;  %v403_v28 = vld [vmem:[#allocation5 + $0x58] sm:$0xff]  ;;  %v402_v31 = vld [vmem:[#allocation5 + $0x50] sm:$0xff]  ;;  %v401_v34 = vld [vmem:[#allocation5 + $0x48] sm:$0xff]  ;;  %s312_s2 = sshll.u32 %s541_s0, 4  ;;  %s313_s2 = int_to_ptr.vmem [resolvable:$true] %s312_s2 }
  0x12   :  { %v400_v37 = vld [vmem:[#allocation5 + $0x40] sm:$0xff]  ;;  %v415_v42 = vld [vmem:[#allocation5 + $0xb8] sm:$0xff]  ;;  %v414_v43 = vld [vmem:[#allocation5 + $0xb0] sm:$0xff] }
  0x13   :  { %94 = vmatpush.bf16.msra.mxu0 %v398_v1  ;;  %291 = vmatpush.bf16.msra.mxu2 %v415_v42  ;;  %v413_v44 = vld [vmem:[#allocation5 + $0xa8] sm:$0xff]  ;;  %v412_v47 = vld [vmem:[#allocation5 + $0xa0] sm:$0xff]  ;;  %v411_v50 = vld [vmem:[#allocation5 + $0x98] sm:$0xff] }
  0x14   :  { %v62_v52 = vld [vmem:[#allocation7 + $0x1] sm:$0x1]  ;;  %v410_v54 = vld [vmem:[#allocation5 + $0x90] sm:$0xff]  ;;  %v424_v58 = vld [vmem:[#allocation7 + $0x2] ss:$0 sm:$0xff] }
  0x15   :  { %v428_v5 = vpop.eup %427  ;;  %211 = vmatpush.bf16.msra.mxu1 %v406_v18  ;;  %v409_v63 = vld [vmem:[#allocation5 + $0x88] sm:$0xff]  ;;  %v408_v0 = vld [vmem:[#allocation5 + $0x80] sm:$0xff] }
  0x16   :  { %333 = vmatmul.msk.bf16.vlgmr.msra.gmra.mxu0 %vm83_vm0, %v60_v3  ;;  %v109_v7 = vmul.f32 2.0, %v428_v5  ;;  %vm113_vm2 = vweird.f32 %v428_v5  ;;  %v425_v1 = vld [vmem:[#allocation7 + $0x3] ss:$0 sm:$0xff] }
  0x17   :  { %292 = vmatpush.bf16.msra.mxu2 %v414_v43 }
  0x18   :  { %v110_v10 = vsub.f32 1.0, %v109_v7  ;;  %v426_v7 = vld [vmem:[#allocation7 + $0x4] ss:$0 sm:$0xff] }
  0x19   :  { %212 = vmatpush.bf16.msra.mxu1 %v405_v22 }
  0x1a   :  { %v111_v14 = vmul.f32 %v428_v5, %v110_v10 }
  0x1b   :  { %293 = vmatpush.bf16.msra.mxu2 %v413_v44 }
  0x1c   :  { %v112_v19 = vadd.f32 %v428_v5, %v111_v14 }
  0x1d   :  { %213 = vmatpush.bf16.msra.mxu1 %v404_v26 }
  0x1e   :  { %v114_v23 = vsel %vm113_vm2, %v428_v5, %v112_v19 }
  0x1f   :  { %294 = vmatpush.bf16.msra.mxu2 %v412_v47 }
  0x21   :  { %214 = vmatpush.bf16.msra.mxu1 %v403_v28 }
  0x23   :  { %295 = vmatpush.bf16.msra.mxu2 %v411_v50 }
  0x25   :  { %215 = vmatpush.bf16.msra.mxu1 %v402_v31 }
  0x27   :  { %296 = vmatpush.bf16.msra.mxu2 %v410_v54 }
  0x29   :  { %216 = vmatpush.bf16.msra.mxu1 %v401_v34 }
  0x2b   :  { %297 = vmatpush.bf16.msra.mxu2 %v409_v63 }
  0x2d   :  { %217 = vmatpush.bf16.msra.mxu1 %v400_v37 }
  0x2f   :  { %298 = vmatpush.bf16.msra.mxu2 %v408_v0 }
  0x93   :  { %v96_v8 = vpop.f32.mrf.mxu0 }
  0x94   :  { %v97_v9 = vadd.f32 %v423_v6, %v96_v8 }
  0x96   :  { %v101_v11 = vsel %vm100_vm1, %v97_v9, 0.0 }
  0x97   :  { %v102_v12 = vrot.slane %v101_v11, 4 }
  0x99   :  { %v103_v15 = vadd.f32 %v102_v12, %v101_v11 }
  0x9b   :  { %v104_v16 = vrot.slane %v103_v15, 2  ;;  %v98_v17 = vpop.f32.mrf.mxu0 }
  0x9d   :  { %v105_v20 = vadd.f32 %v104_v16, %v103_v15 }
  0x9f   :  { %v106_v21 = vrot.slane %v105_v20, 1 }
  0xa1   :  { %v107_v24 = vadd.f32 %v106_v21, %v105_v20 }
  0xa3   :  { %v115_v25 = vmul.f32 %v114_v23, %v107_v24 }
  0xa5   :  { %v116_v27 = vsub.f32 %v97_v9, %v115_v25 }
  0xa7   :  { %v117_v29 = vmul.f32 %v116_v27, %v116_v27 }
  0xa9   :  { %v118_v30 = vsel %vm100_vm1, %v117_v29, 0.0 }
  0xaa   :  { %v119_v32 = vrot.slane %v118_v30, 4 }
  0xac   :  { %v120_v33 = vadd.f32 %v119_v32, %v118_v30 }
  0xae   :  { %v121_v35 = vrot.slane %v120_v33, 2 }
  0xb0   :  { %v122_v36 = vadd.f32 %v121_v35, %v120_v33 }
  0xb2   :  { %v123_v38 = vrot.slane %v122_v36, 1 }
  0xb4   :  { %v124_v39 = vadd.f32 %v123_v38, %v122_v36 }
  0xb6   :  { %v125_v40 = vmul.f32 %v124_v39, %v114_v23 }
  0xb8   :  { %v126_v41 = vadd.f32 1e-05, %v125_v40 }
  0xba   :  { %429 = vrsqrt.f32 %v126_v41  ;;  %vm133_vm4 = vweird.f32 %v126_v41 }
  0xc0   :  { %v430_v45 = vpop.eup %429 }
  0xc1   :  { %v128_v46 = vmul.f32 %v430_v45, %v126_v41  ;;  %vm134_vm3 = vweird.f32 %v430_v45 }
  0xc2   :  { %vm135_vm5 = vmor %vm133_vm4, %vm134_vm3 }
  0xc3   :  { %v129_v48 = vmul.f32 %v430_v45, %v128_v46 }
  0xc5   :  { %v130_v49 = vmul.f32 0.5, %v129_v48 }
  0xc7   :  { %v131_v51 = vsub.f32 1.5, %v130_v49 }
  0xc9   :  { %v132_v53 = vmul.f32 %v430_v45, %v131_v51 }
  0xcb   :  { %v136_v55 = vsel %vm135_vm5, %v430_v45, %v132_v53 }
  0xcc   :  { %v137_v56 = vmul.f32 %v136_v55, %v62_v52 }
  0xce   :  { %v138_v57 = vperm.slane %v137_v56, 0 }
  0xd0   :  { %v139_v59 = vmul.f32 %v138_v57, %v116_v27 }
  0xd2   :  { %v141_v60 = vadd.f32 %v424_v58, %v139_v59 }
  0xd4   :  { %v142_v61 = vmax.f32 %v141_v60, 0.0 }
  0xd6   :  { %v143_v62 = vpack.c.bf16 %v142_v61, %v142_v61 }
  0xd8   :  { %218 = vmatmul.bf16.vlgmr.msra.gmra.mxu1 %v143_v62 }
 0x155   :  { %v219_v2 = vpop.f32.mrf.mxu1 }
 0x156   :  { %v220_v3 = vadd.f32 %v425_v1, %v219_v2 }
 0x158   :  { %v223_v4 = vmax.f32 %v220_v3, 0.0 }
 0x15a   :  { %v224_v5 = vpack.c.bf16 %v223_v4, %v223_v4 }
 0x15c   :  { %299 = vmatmul.bf16.vlgmr.msra.gmra.mxu2 %v224_v5 }
 0x15d   :  { %v221_v6 = vpop.f32.mrf.mxu1 }
 0x1df   :  { %v300_v8 = vpop.f32.mrf.mxu2 }
 0x1e0   :  { %v301_v9 = vadd.f32 %v426_v7, %v300_v8 }
 0x1e2   :  { %431 = vtanh.f32 %v301_v9 }
 0x1e7   :  { %v302_v10 = vpop.f32.mrf.mxu2 }
 0x1e8   :  { %v432_v11 = vpop.eup %431 }
 0x1e9   :  { %306 = vst.msk [vmem:[#allocation8] sm:$0x3] %vm305_vm6, %v432_v11 }
 0x1ea   :  { %317 = dma.vmem_to_hbm [thread:$0]  %s313_s2, 32, %s315_s30, [#allocation4]  }
 0x1eb   :  { %533 = dma.done.wait [#allocation4], 32  }
 0x1ec   :  { %534 = vsyncadd [#allocation4], 4294967264 }
 0x1ed   :  { %322 = vsyncpa [#allocation3], 1 }
 0x1ee   :  { %323 = vsyncpa [#allocation6], 1 }
 0x1ef   :  { %324 = vsyncpa [#allocation4], 1 }

</bundles_post_ra>
